<compile_context>
chip_gen: v7x
topology: tpu7x:2x2x1
jax: 0.10.0
libtpu: 0.0.40
codegen_flags: <defaults>
</compile_context>

<pallas_src>
import math

import jax
import jax.numpy as jnp
from jax.experimental import pallas as pl
from jax.experimental.pallas import tpu as pltpu

EMBED = 20
MAX_LEN = 10000

_DENSE_COLS = 640                        # lcm(EMBED, 128): lane-dense row width
_ROWS_PER_DENSE = _DENSE_COLS // EMBED   # 32 original rows per lane-dense row


def build_pe_buffers(max_len=MAX_LEN, embed_size=EMBED):
    """Built once, mirroring the PyTorch register_buffer in __init__.

    Returns:
      pe:       (max_len, embed_size) f32 -- identical to the PyTorch pe[0] buffer.
      pe_dense: (ceil(max_len/32), 640) f32 -- same values, flattened row-major and
                viewed lane-dense (zero pad only on the trailing rows).
    """
    position = jnp.arange(0, max_len, dtype=jnp.float32)[:, None]
    div_term = jnp.exp(jnp.arange(0, embed_size, 2, dtype=jnp.float32)
                       * (-math.log(10000.0) / embed_size))
    pe = jnp.zeros((max_len, embed_size), jnp.float32)
    pe = pe.at[:, 0::2].set(jnp.sin(position * div_term))
    pe = pe.at[:, 1::2].set(jnp.cos(position * div_term))

    pad_rows = (-max_len) % _ROWS_PER_DENSE
    pe_dense = jnp.pad(pe, ((0, pad_rows), (0, 0))).reshape(-1, _DENSE_COLS)
    return pe, pe_dense


def _pe_add_kernel(x_ref, pe_ref, o_ref):
    # Pure elementwise VPU add; no MXU work.
    o_ref[...] = x_ref[...] + pe_ref[...]
    # TODO(synk): nn.Dropout(p=0.4) is the identity in eval/inference; a training-mode
    # kernel would mask + scale by 1/(1-p) via pltpu.prng_seed / pltpu.prng_random_bits.


def _run(x2d, pe2d, block_rows):
    """Row-blocked elementwise add of x2d (R, C) with the first R rows of pe2d."""
    R, C = x2d.shape
    br = min(block_rows, max(8, (R // 8) * 8))   # 8-sublane-aligned block, <= R
    grid = (pl.cdiv(R, br),)
    spec = pl.BlockSpec((br, C), lambda i: (i, 0))
    return pl.pallas_call(
        _pe_add_kernel,
        out_shape=jax.ShapeDtypeStruct((R, C), x2d.dtype),
        grid=grid,
        in_specs=[spec, spec],     # pe2d is windowed by the BlockSpec: only the
        out_specs=spec,            # row-blocks the grid touches are DMA'd.
        compiler_params=pltpu.CompilerParams(
            dimension_semantics=("parallel",)),   # shards rows over v7x's 2 TCs
    )(x2d, pe2d)


def positional_encoding(x, pe, pe_dense, *, block_rows=512):
    """out = x + pe[:x.shape[0], :]   (dropout = identity / eval mode)."""
    S, E = x.shape
    assert E == pe.shape[1] == EMBED

    # Lane-dense path: view the contiguous row-major (S, 20) buffers as (S//32, 640)
    # (a free reshape) so stores fill all 128 lanes instead of 20 masked lanes.
    n_dense = S // _ROWS_PER_DENSE
    if S % _ROWS_PER_DENSE == 0 and n_dense >= 8:
        out = _run(x.reshape(n_dense, _DENSE_COLS), pe_dense, block_rows)
        return out.reshape(S, E)

    # General path (any S): row-blocked (br, 20) tiles on the natural (S, 20) layout.
    if S < 8:
        # Tiny ragged corner: pad rows to the 8-sublane minimum (negligible copy).
        xp = jnp.pad(x, ((0, 8 - S), (0, 0)))
        return _run(xp, pe, block_rows)[:S]
    return _run(x, pe, block_rows)


# -------------------------------------------------------------------------
# Pure-JAX reference mirroring the PyTorch forward (dropout = identity, eval)
# -------------------------------------------------------------------------
def reference(x, pe):
    return x + pe[: x.shape[0], :]


if __name__ == "__main__":
    pe, pe_dense = build_pe_buffers()

    key = jax.random.PRNGKey(0)
    # S=8   -> general path, single (8, 20) block
    # S=40  -> general path with a multi-step grid (block_rows=8 -> grid=(5,))
    # S=256 -> lane-dense path ((8, 640) blocks, full-lane stores)
    for S, br in ((8, 512), (40, 8), (256, 512)):
        key, sub = jax.random.split(key)
        x = jax.random.normal(sub, (S, EMBED), dtype=jnp.float32)
        out = jax.block_until_ready(positional_encoding(x, pe, pe_dense, block_rows=br))
        ref = reference(x, pe)
        assert out.shape == (S, EMBED)
        max_err = float(jnp.max(jnp.abs(out - ref)))
        assert max_err < 1e-6, f"S={S}: mismatch vs reference: {max_err}"
    print("KERNEL_OK")
</pallas_src>

<mosaic_0001>
module attributes {stable_mosaic.version = 11 : i64} {
  func.func @_pe_add_kernel(%arg0: i32, %arg1: memref<8x20xf32, #tpu.memory_space<vmem>>, %arg2: memref<8x20xf32, #tpu.memory_space<vmem>>, %arg3: memref<8x20xf32, #tpu.memory_space<vmem>>) attributes {dimension_semantics = [#tpu.dimension_semantics<parallel>], iteration_bounds = array<i64: 1>, scalar_prefetch = 0 : i64, scratch_operands = 0 : i64, tpu.core_type = #tpu.core_type<tc>, window_params = [{transform_indices = @transform_0, window_bounds = array<i64: 8, 20>}, {transform_indices = @transform_1, window_bounds = array<i64: 8, 20>}, {transform_indices = @transform_2, window_bounds = array<i64: 8, 20>}]} {
    %c0 = arith.constant 0 : index
    %c0_0 = arith.constant 0 : index
    %0 = vector.load %arg1[%c0, %c0_0] : memref<8x20xf32, #tpu.memory_space<vmem>>, vector<8x20xf32>
    %c0_1 = arith.constant 0 : index
    %c0_2 = arith.constant 0 : index
    %1 = vector.load %arg2[%c0_1, %c0_2] : memref<8x20xf32, #tpu.memory_space<vmem>>, vector<8x20xf32>
    %2 = arith.addf %0, %1 : vector<8x20xf32>
    %c0_3 = arith.constant 0 : index
    %c0_4 = arith.constant 0 : index
    %3 = vector.load %arg3[%c0_3, %c0_4] : memref<8x20xf32, #tpu.memory_space<vmem>>, vector<8x20xf32>
    tpu.vector_store %arg3[%c0_3, %c0_4], %2 {strides = array<i32>} : memref<8x20xf32, #tpu.memory_space<vmem>>, vector<8x20xf32>,
    return
  }
  func.func @transform_0(%arg0: i32) -> (i32, i32) {
    %c0_i32 = arith.constant 0 : i32
    %c0_i32_0 = arith.constant 0 : i32
    return %arg0, %c0_i32 : i32, i32
  }
  func.func @transform_1(%arg0: i32) -> (i32, i32) {
    %c0_i32 = arith.constant 0 : i32
    %c0_i32_0 = arith.constant 0 : i32
    return %arg0, %c0_i32 : i32, i32
  }
  func.func @transform_2(%arg0: i32) -> (i32, i32) {
    %c0_i32 = arith.constant 0 : i32
    %c0_i32_0 = arith.constant 0 : i32
    return %arg0, %c0_i32 : i32, i32
  }
}

</mosaic_0001>

<bundles_post_ra>
// kernel: tpu_custom_call.1
= control target key start
LH: loop header
LB: loop body
LE: loop exit
PB: predicated region body
PF: predicated region fallthrough
CT: control target
= control target key end

     0   :  { %vm15_vm0 = vcmask 162816   ;;  %s90_s0 = inlined_call_operand.vmem [shape: f32[8,20], index: 0, kind: input, shape index: {}]   ;;  %s91_s1 = inlined_call_operand.vmem [shape: f32[10000,20], index: 1, kind: input, shape index: {}]   ;;  %s92_s2 = inlined_call_operand.hbm [shape: f32[8,20], index: 2, kind: output, shape index: {}]  }
   0x1   :  { %v12_v0 = vld [vmem:[%s90_s0] sm:$0xff] }
   0x2   :  { %v13_v1 = vld [vmem:[%s91_s1] sm:$0xff] }
   0x3   :  { %7 = vsyncpa [#allocation3], 0  ;;  %v14_v2 = vadd.f32 %v13_v1, %v12_v0  ;;  %s56_s13 = smov [#allocation2]  }
   0x4   :  { %s23_s14 = sshll.u32 %s56_s13, 4  ;;  %s24_s14 = int_to_ptr.vmem [resolvable:$true] %s23_s14 }
   0x5   :  { %16 = vst.msk [vmem:[#allocation2] sm:$0xff] %vm15_vm0, %v14_v2  ;;  %s32_s15 = scalar_lea.vmem %s24_s14, 128  ;;  %p37_p1 = scmp.lt.s32.totalorder %s24_s14, %s24_s14 }
   0x6   :  { %p33_p0 = scmp.ne.s32.totalorder %s24_s14, %s32_s15  ;;  %p38_p2 = scmp.lt.s32.totalorder %s32_s15, %s32_s15 }
   0x8   :  { %p39_p3 = por %p38_p2, %p37_p1 }
   0xa   :  { %p40_p4 = pnand %p39_p3, %p33_p0 }
   0xc   :  { %43 = shalt.err (!%p40_p4)
}
   0xd   :  { %s44_s17 = scalar_lea.hbm %s92_s2, 128 }
   0xe   :  { %p45_p5 = scmp.ne.s32.totalorder %s92_s2, %s44_s17  ;;  %p48_p6 = scmp.lt.u32.totalorder %s44_s17, %s92_s2 }
  0x10   :  { %p50_p7 = pnand %p48_p6, %p45_p5 }
  0x12   :  { %53 = shalt.err (!%p50_p7)
}
  0x13   :  { %26 = dma.vmem_to_hbm [thread:$0]  %s24_s14, 128, %s92_s2, [#allocation3]  }
  0x14   :  { %54 = dma.done.wait [#allocation3], 128  }
  0x15   :  { %55 = vsyncadd [#allocation3], 4294967168 }
  0x16   :  { %30 = vsyncpa [#allocation3], 1 }

</bundles_post_ra>
